<compile_context>
chip_gen: v5e
topology: v5e:2x2
jax: 0.10.0
libtpu: 0.0.40
codegen_flags: <defaults>
</compile_context>

<pallas_src>
import functools

import jax
import jax.numpy as jnp
from jax.experimental import pallas as pl
from jax.experimental.pallas import tpu as pltpu

BN_EPS = 1e-5
LANE = 128      # lane width: pad K and C_out to multiples of this
TILE_M = 256    # rows of output pixels per grid step


def _round_up(x, m):
    return (x + m - 1) // m * m


def _conv_stats_kernel(p_ref, w_ref, conv_ref, stats_ref):
    """Pass 1 (per M-tile): conv matmul + per-channel moment partials.

    p_ref:     (TILE_M, K_pad)   bf16 im2col patches tile
    w_ref:     (K_pad, C_pad)    bf16 flattened conv weight (resident)
    conv_ref:  (TILE_M, C_pad)   f32 raw conv output tile
    stats_ref: (1, 8, C_pad)     f32 row 0 = sum, row 1 = sum of squares
    """
    acc = jnp.dot(p_ref[...], w_ref[...], preferred_element_type=jnp.float32)
    conv_ref[...] = acc

    # Tile-local moments; zero-padded M rows contribute exactly 0 to both, so
    # dividing by the true M later yields the full-batch BN statistics.
    s = jnp.sum(acc, axis=0, keepdims=True)          # (1, C_pad)
    sq = jnp.sum(acc * acc, axis=0, keepdims=True)   # (1, C_pad)
    pad = jnp.zeros((6, acc.shape[1]), jnp.float32)
    stats_ref[...] = jnp.concatenate([s, sq, pad], axis=0).reshape(stats_ref.shape)


def _bn_relu_kernel(x_ref, scale_ref, shift_ref, o_ref):
    """Pass 2 (per M-tile): y = max(x * scale + shift, 0) with folded BN."""
    o_ref[...] = jnp.maximum(
        x_ref[...] * scale_ref[...] + shift_ref[...], 0.0
    ).astype(o_ref.dtype)


def _im2col_nhwc(x_nhwc, k, stride, pad):
    """Extract conv patches. Returns (N*Ho*Wo, k*k*C), Ho, Wo."""
    n, h, w, c = x_nhwc.shape
    xp = jnp.pad(x_nhwc, ((0, 0), (pad, pad), (pad, pad), (0, 0)))
    ho = (h + 2 * pad - k) // stride + 1
    wo = (w + 2 * pad - k) // stride + 1
    slices = []
    for i in range(k):
        for j in range(k):
            slices.append(
                xp[:, i:i + stride * ho:stride, j:j + stride * wo:stride, :]
            )
    # (N, Ho, Wo, k*k, C): patch index ordered (kh, kw) then channel.
    patches = jnp.stack(slices, axis=3)
    return patches.reshape(n * ho * wo, k * k * c), ho, wo


@functools.partial(jax.jit, static_argnames=("kernel_size", "stride", "padding"))
def conv2d_n_rel(x_nchw, weight_oihw, gamma, beta, *, kernel_size, stride, padding):
    """Forward pass of Conv2d_N_REL (bn_or_gn='bn', training-mode BN statistics)."""
    n, c_in, h, w = x_nchw.shape
    c_out = weight_oihw.shape[0]
    k = kernel_size

    # --- host-side glue: layout + im2col (plain JAX, fused by XLA) -------------
    x_nhwc = jnp.transpose(x_nchw, (0, 2, 3, 1))
    patches, ho, wo = _im2col_nhwc(x_nhwc, k, stride, padding)   # (M, K) f32
    m = patches.shape[0]
    k_dim = patches.shape[1]

    # Lane-dense padding: K and C_out to multiples of 128, M to a multiple of TILE_M.
    k_pad = _round_up(k_dim, LANE)
    c_pad = _round_up(c_out, LANE)
    m_pad = _round_up(m, TILE_M)
    n_tiles = m_pad // TILE_M

    # bf16 MXU operands (f32 accumulation inside the kernel).
    patches_p = jnp.pad(
        patches, ((0, m_pad - m), (0, k_pad - k_dim))
    ).astype(jnp.bfloat16)
    w_flat = jnp.transpose(weight_oihw, (2, 3, 1, 0)).reshape(k * k * c_in, c_out)
    w_p = jnp.pad(
        w_flat, ((0, k_pad - k_dim), (0, c_pad - c_out))
    ).astype(jnp.bfloat16)

    cparams = pltpu.CompilerParams(
        dimension_semantics=("parallel",),
        vmem_limit_bytes=32 * 1024 * 1024,
    )

    # --- pass 1: tiled conv matmul + per-tile BN moment partials ---------------
    conv_out, part_stats = pl.pallas_call(
        _conv_stats_kernel,
        out_shape=(
            jax.ShapeDtypeStruct((m_pad, c_pad), jnp.float32),
            jax.ShapeDtypeStruct((n_tiles, 8, c_pad), jnp.float32),
        ),
        grid_spec=pltpu.PrefetchScalarGridSpec(
            num_scalar_prefetch=0,
            grid=(n_tiles,),
            in_specs=[
                pl.BlockSpec((TILE_M, k_pad), lambda i: (i, 0)),   # patches tile
                pl.BlockSpec((k_pad, c_pad), lambda i: (0, 0)),    # weight (resident)
            ],
            out_specs=[
                pl.BlockSpec((TILE_M, c_pad), lambda i: (i, 0)),   # raw conv tile
                pl.BlockSpec((1, 8, c_pad), lambda i: (i, 0, 0)),  # per-tile moments
            ],
        ),
        compiler_params=cparams,
    )(patches_p, w_p)

    # --- combine partials -> full-batch BN stats, folded into scale/shift ------
    # (tiny per-channel vectors; reduction is over the full N*Ho*Wo extent)
    ch_sum = jnp.sum(part_stats[:, 0, :], axis=0)
    ch_sq = jnp.sum(part_stats[:, 1, :], axis=0)
    mean = ch_sum / m
    var = jnp.maximum(ch_sq / m - mean * mean, 0.0)   # biased variance, f32
    inv_std = jax.lax.rsqrt(var + BN_EPS)
    gamma_p = jnp.pad(gamma.astype(jnp.float32), (0, c_pad - c_out))
    beta_p = jnp.pad(beta.astype(jnp.float32), (0, c_pad - c_out))
    scale = (gamma_p * inv_std).reshape(1, c_pad)
    shift = (beta_p - mean * gamma_p * inv_std).reshape(1, c_pad)

    # --- pass 2: normalize + ReLU (single FMA + max per element) ---------------
    out_flat = pl.pallas_call(
        _bn_relu_kernel,
        out_shape=jax.ShapeDtypeStruct((m_pad, c_pad), jnp.float32),
        grid_spec=pltpu.PrefetchScalarGridSpec(
            num_scalar_prefetch=0,
            grid=(n_tiles,),
            in_specs=[
                pl.BlockSpec((TILE_M, c_pad), lambda i: (i, 0)),   # conv tile
                pl.BlockSpec((1, c_pad), lambda i: (0, 0)),        # scale (resident)
                pl.BlockSpec((1, c_pad), lambda i: (0, 0)),        # shift (resident)
            ],
            out_specs=pl.BlockSpec((TILE_M, c_pad), lambda i: (i, 0)),
        ),
        compiler_params=cparams,
    )(conv_out, scale, shift)

    # Strip padding, back to NCHW.
    out = out_flat[:m, :c_out].reshape(n, ho, wo, c_out)
    return jnp.transpose(out, (0, 3, 1, 2))


def _reference(x_nchw, weight_oihw, gamma, beta, stride, padding):
    conv = jax.lax.conv_general_dilated(
        x_nchw, weight_oihw,
        window_strides=(stride, stride),
        padding=((padding, padding), (padding, padding)),
        dimension_numbers=("NCHW", "OIHW", "NCHW"),
    )
    mean = conv.mean(axis=(0, 2, 3), keepdims=True)
    var = ((conv - mean) ** 2).mean(axis=(0, 2, 3), keepdims=True)
    y = (conv - mean) * jax.lax.rsqrt(var + BN_EPS)
    y = y * gamma.reshape(1, -1, 1, 1) + beta.reshape(1, -1, 1, 1)
    return jnp.maximum(y, 0.0)


if __name__ == "__main__":
    # Module config (bn_or_gn='bn'): in_channels=4, out_channels=16, k=3, s=1, p=1.
    N, C_IN, H, W = 2, 4, 16, 16
    C_OUT, K, STRIDE, PAD = 16, 3, 1, 1

    key = jax.random.PRNGKey(0)
    kx, kw, kg, kb = jax.random.split(key, 4)
    x = jax.random.normal(kx, (N, C_IN, H, W), dtype=jnp.float32)
    weight = 0.1 * jax.random.normal(kw, (C_OUT, C_IN, K, K), dtype=jnp.float32)
    gamma = 1.0 + 0.1 * jax.random.normal(kg, (C_OUT,), dtype=jnp.float32)
    beta = 0.1 * jax.random.normal(kb, (C_OUT,), dtype=jnp.float32)

    out = conv2d_n_rel(x, weight, gamma, beta,
                       kernel_size=K, stride=STRIDE, padding=PAD)
    out = jax.block_until_ready(out)
    assert out.shape == (N, C_OUT, H, W), out.shape

    # Tight check vs a reference that uses the same bf16-rounded MXU operands
    # (f32 accumulation in both), plus a loose sanity check vs the pure-f32 ref.
    x_bf = x.astype(jnp.bfloat16).astype(jnp.float32)
    w_bf = weight.astype(jnp.bfloat16).astype(jnp.float32)
    ref_bf = _reference(x_bf, w_bf, gamma, beta, STRIDE, PAD)
    ref_f32 = _reference(x, weight, gamma, beta, STRIDE, PAD)

    err_bf = float(jnp.abs(out - ref_bf).max())
    err_f32 = float(jnp.abs(out - ref_f32).max())
    assert jnp.allclose(out, ref_bf, atol=5e-3, rtol=5e-3), err_bf
    assert jnp.allclose(out, ref_f32, atol=5e-2, rtol=5e-2), err_f32

    print("KERNEL_OK")
</pallas_src>

<mosaic_0001>
module attributes {stable_mosaic.version = 11 : i64} {
  func.func @_conv_stats_kernel(%arg0: i32, %arg1: memref<256x128xbf16, #tpu.memory_space<vmem>>, %arg2: memref<128x128xbf16, #tpu.memory_space<vmem>>, %arg3: memref<256x128xf32, #tpu.memory_space<vmem>>, %arg4: memref<1x8x128xf32, #tpu.memory_space<vmem>>) attributes {dimension_semantics = [#tpu.dimension_semantics<parallel>], iteration_bounds = array<i64: 2>, scalar_prefetch = 0 : i64, scratch_operands = 0 : i64, tpu.core_type = #tpu.core_type<tc>, window_params = [{transform_indices = @transform_0, window_bounds = array<i64: 256, 128>}, {pipeline_mode = #tpu.pipeline_mode<synchronous>, transform_indices = @transform_1, window_bounds = array<i64: 128, 128>}, {transform_indices = @transform_2, window_bounds = array<i64: 256, 128>}, {transform_indices = @transform_3, window_bounds = array<i64: 1, 8, 128>}]} {
    %c0 = arith.constant 0 : index
    %c0_0 = arith.constant 0 : index
    %0 = vector.load %arg1[%c0, %c0_0] : memref<256x128xbf16, #tpu.memory_space<vmem>>, vector<256x128xbf16>
    %c0_1 = arith.constant 0 : index
    %c0_2 = arith.constant 0 : index
    %1 = vector.load %arg2[%c0_1, %c0_2] : memref<128x128xbf16, #tpu.memory_space<vmem>>, vector<128x128xbf16>
    %cst = arith.constant dense<0.000000e+00> : vector<256x128xf32>
    %2 = tpu.matmul %0, %1, %cst {dimension_numbers = #tpu.dot_dimension_numbers<[1], [0], [0], [1], [0, 0, 1, 1], [], []>} : vector<256x128xbf16>, vector<128x128xbf16>, vector<256x128xf32> -> vector<256x128xf32>
    %c0_3 = arith.constant 0 : index
    %c0_4 = arith.constant 0 : index
    %3 = vector.load %arg3[%c0_3, %c0_4] : memref<256x128xf32, #tpu.memory_space<vmem>>, vector<256x128xf32>
    tpu.vector_store %arg3[%c0_3, %c0_4], %2 {strides = array<i32>} : memref<256x128xf32, #tpu.memory_space<vmem>>, vector<256x128xf32>,
    %cst_5 = arith.constant dense<0.000000e+00> : vector<128xf32>
    %4 = vector.multi_reduction <add>, %2, %cst_5 [0] : vector<256x128xf32> to vector<128xf32>
    %5 = vector.shape_cast %4 : vector<128xf32> to vector<1x128xf32>
    %6 = arith.mulf %2, %2 : vector<256x128xf32>
    %cst_6 = arith.constant dense<0.000000e+00> : vector<128xf32>
    %7 = vector.multi_reduction <add>, %6, %cst_6 [0] : vector<256x128xf32> to vector<128xf32>
    %8 = vector.shape_cast %7 : vector<128xf32> to vector<1x128xf32>
    %cst_7 = arith.constant 0.000000e+00 : f32
    %9 = vector.broadcast %cst_7 : f32 to vector<6x128xf32>
    %10 = tpu.concatenate %5, %8, %9 in 0 : vector<1x128xf32>, vector<1x128xf32>, vector<6x128xf32> -> vector<8x128xf32>
    %11 = vector.shape_cast %10 : vector<8x128xf32> to vector<1x8x128xf32>
    %c0_8 = arith.constant 0 : index
    %c0_9 = arith.constant 0 : index
    %c0_10 = arith.constant 0 : index
    %12 = vector.load %arg4[%c0_8, %c0_9, %c0_10] : memref<1x8x128xf32, #tpu.memory_space<vmem>>, vector<1x8x128xf32>
    tpu.vector_store %arg4[%c0_8, %c0_9, %c0_10], %11 {strides = array<i32>} : memref<1x8x128xf32, #tpu.memory_space<vmem>>, vector<1x8x128xf32>,
    return
  }
  func.func @transform_0(%arg0: i32) -> (i32, i32) {
    %c0_i32 = arith.constant 0 : i32
    %c0_i32_0 = arith.constant 0 : i32
    return %arg0, %c0_i32 : i32, i32
  }
  func.func @transform_1(%arg0: i32) -> (i32, i32) {
    %c0_i32 = arith.constant 0 : i32
    %c0_i32_0 = arith.constant 0 : i32
    %c0_i32_1 = arith.constant 0 : i32
    return %c0_i32, %c0_i32_0 : i32, i32
  }
  func.func @transform_2(%arg0: i32) -> (i32, i32) {
    %c0_i32 = arith.constant 0 : i32
    %c0_i32_0 = arith.constant 0 : i32
    return %arg0, %c0_i32 : i32, i32
  }
  func.func @transform_3(%arg0: i32) -> (i32, i32, i32) {
    %c0_i32 = arith.constant 0 : i32
    %c0_i32_0 = arith.constant 0 : i32
    %c0_i32_1 = arith.constant 0 : i32
    return %arg0, %c0_i32, %c0_i32_0 : i32, i32, i32
  }
}

module attributes {stable_mosaic.version = 11 : i64} {
  func.func @_bn_relu_kernel(%arg0: i32, %arg1: memref<256x128xf32, #tpu.memory_space<vmem>>, %arg2: memref<1x128xf32, #tpu.memory_space<vmem>>, %arg3: memref<1x128xf32, #tpu.memory_space<vmem>>, %arg4: memref<256x128xf32, #tpu.memory_space<vmem>>) attributes {dimension_semantics = [#tpu.dimension_semantics<parallel>], iteration_bounds = array<i64: 2>, scalar_prefetch = 0 : i64, scratch_operands = 0 : i64, tpu.core_type = #tpu.core_type<tc>, window_params = [{transform_indices = @transform_0, window_bounds = array<i64: 256, 128>}, {pipeline_mode = #tpu.pipeline_mode<synchronous>, transform_indices = @transform_1, window_bounds = array<i64: 1, 128>}, {pipeline_mode = #tpu.pipeline_mode<synchronous>, transform_indices = @transform_2, window_bounds = array<i64: 1, 128>}, {transform_indices = @transform_3, window_bounds = array<i64: 256, 128>}]} {
    %c0 = arith.constant 0 : index
    %c0_0 = arith.constant 0 : index
    %0 = vector.load %arg1[%c0, %c0_0] : memref<256x128xf32, #tpu.memory_space<vmem>>, vector<256x128xf32>
    %c0_1 = arith.constant 0 : index
    %c0_2 = arith.constant 0 : index
    %1 = vector.load %arg2[%c0_1, %c0_2] : memref<1x128xf32, #tpu.memory_space<vmem>>, vector<1x128xf32>
    %2 = vector.broadcast %1 : vector<1x128xf32> to vector<256x128xf32>
    %3 = arith.mulf %0, %2 : vector<256x128xf32>
    %c0_3 = arith.constant 0 : index
    %c0_4 = arith.constant 0 : index
    %4 = vector.load %arg3[%c0_3, %c0_4] : memref<1x128xf32, #tpu.memory_space<vmem>>, vector<1x128xf32>
    %5 = vector.broadcast %4 : vector<1x128xf32> to vector<256x128xf32>
    %6 = arith.addf %3, %5 : vector<256x128xf32>
    %cst = arith.constant 0.000000e+00 : f32
    %7 = vector.broadcast %cst : f32 to vector<256x128xf32>
    %8 = arith.maximumf %6, %7 : vector<256x128xf32>
    %c0_5 = arith.constant 0 : index
    %c0_6 = arith.constant 0 : index
    %9 = vector.load %arg4[%c0_5, %c0_6] : memref<256x128xf32, #tpu.memory_space<vmem>>, vector<256x128xf32>
    tpu.vector_store %arg4[%c0_5, %c0_6], %8 {strides = array<i32>} : memref<256x128xf32, #tpu.memory_space<vmem>>, vector<256x128xf32>,
    return
  }
  func.func @transform_0(%arg0: i32) -> (i32, i32) {
    %c0_i32 = arith.constant 0 : i32
    %c0_i32_0 = arith.constant 0 : i32
    return %arg0, %c0_i32 : i32, i32
  }
  func.func @transform_1(%arg0: i32) -> (i32, i32) {
    %c0_i32 = arith.constant 0 : i32
    %c0_i32_0 = arith.constant 0 : i32
    %c0_i32_1 = arith.constant 0 : i32
    return %c0_i32, %c0_i32_0 : i32, i32
  }
  func.func @transform_2(%arg0: i32) -> (i32, i32) {
    %c0_i32 = arith.constant 0 : i32
    %c0_i32_0 = arith.constant 0 : i32
    %c0_i32_1 = arith.constant 0 : i32
    return %c0_i32, %c0_i32_0 : i32, i32
  }
  func.func @transform_3(%arg0: i32) -> (i32, i32) {
    %c0_i32 = arith.constant 0 : i32
    %c0_i32_0 = arith.constant 0 : i32
    return %arg0, %c0_i32 : i32, i32
  }
}

</mosaic_0001>

<bundles_post_ra>
// kernel: conv2d_n_rel.3
= control target key start
LH: loop header
LB: loop body
LE: loop exit
PB: predicated region body
PF: predicated region fallthrough
CT: control target
= control target key end

     0   :  { %s447_s12 = smov 0   ;;  %s606_s0 = inlined_call_operand.vmem [shape: f32[512,128], index: 0, kind: input, shape index: {}]   ;;  %s607_s1 = inlined_call_operand.vmem [shape: f32[1,128], index: 1, kind: input, shape index: {}]   ;;  %s608_s2 = inlined_call_operand.vmem [shape: f32[1,128], index: 2, kind: input, shape index: {}]   ;;  %s609_s3 = inlined_call_operand.vmem [shape: f32[512,128], index: 3, kind: output, shape index: {}]  }
   0x1 LB: > { %s398_s13 = sadd.s32 4294967295, %s425_s12   ;;  %p402_p0 = scmp.ge.s32.totalorder %s425_s12, 1  ;;  %s425_s12 = sphi %s447_s12, %s13_s12  }
   0x2   : > { %p138_p1 = scmp.lt.s32.totalorder %s425_s12, 3 }
   0x4   : > { %p139_p2 = pnand %p402_p0, %p138_p1 }
   0x5   : > { %s403_s14 = sshll.u32 (!%p139_p2), %s398_s13, 5 }
   0x6   : > { %142 = sbr.rel (%p139_p2) target bundleno = 53 (0x35), region = 32  ;;  %p163_p3 = scmp.lt.s32.totalorder (!%p139_p2), %s403_s14, 63 }
   0xb   : > { %s611_s14 = smov (!%p163_p3, %s403_s14), 63  ;;  %v458_v0 = vld [vmem:[%s607_s1] ss:$0 sm:$0xff] }
   0xc   : > { %s404_s17 = sshll.u32 %s611_s14, 3  ;;  %v468_v1 = vld [vmem:[%s608_s2] ss:$0 sm:$0xff] }
   0xd   : > { %s463_s20 = scalar_lea.vmem %s606_s0, %s404_s17  ;;  %s491_s25 = scalar_lea.vmem %s609_s3, %s404_s17 }
   0xe   : > { %v174_v2 = vld [vmem:[%s463_s20] sm:$0xff]  ;;  %v175_v3 = vld [vmem:[%s463_s20 + $0x8] sm:$0xff]  ;;  %v176_v4 = vld [vmem:[%s463_s20 + $0x10] sm:$0xff] }
   0xf   : > { %v210_v5 = vmul.f32 %v458_v0, %v174_v2  ;;  %v211_v6 = vmul.f32 %v458_v0, %v175_v3  ;;  %v212_v7 = vmul.f32 %v458_v0, %v176_v4  ;;  %v177_v8 = vld [vmem:[%s463_s20 + $0x18] sm:$0xff]  ;;  %v178_v9 = vld [vmem:[%s463_s20 + $0x20] sm:$0xff]  ;;  %v179_v10 = vld [vmem:[%s463_s20 + $0x28] sm:$0xff] }
  0x10   : > { %v213_v11 = vmul.f32 %v458_v0, %v177_v8  ;;  %v214_v12 = vmul.f32 %v458_v0, %v178_v9  ;;  %v215_v13 = vmul.f32 %v458_v0, %v179_v10  ;;  %v180_v14 = vld [vmem:[%s463_s20 + $0x30] sm:$0xff]  ;;  %v181_v15 = vld [vmem:[%s463_s20 + $0x38] sm:$0xff]  ;;  %v182_v24 = vld [vmem:[%s463_s20 + $0x40] sm:$0xff] }
  0x11   : > { %v246_v16 = vadd.f32 %v468_v1, %v210_v5  ;;  %v247_v17 = vadd.f32 %v468_v1, %v211_v6  ;;  %v248_v18 = vadd.f32 %v468_v1, %v212_v7  ;;  %v216_v19 = vmul.f32 %v458_v0, %v180_v14  ;;  %v183_v25 = vld [vmem:[%s463_s20 + $0x48] sm:$0xff]  ;;  %v184_v26 = vld [vmem:[%s463_s20 + $0x50] sm:$0xff]  ;;  %v185_v31 = vld [vmem:[%s463_s20 + $0x58] sm:$0xff] }
  0x12   : > { %v249_v20 = vadd.f32 %v468_v1, %v213_v11  ;;  %v250_v21 = vadd.f32 %v468_v1, %v214_v12  ;;  %v251_v22 = vadd.f32 %v468_v1, %v215_v13  ;;  %v217_v23 = vmul.f32 %v458_v0, %v181_v15  ;;  %v186_v32 = vld [vmem:[%s463_s20 + $0x60] sm:$0xff]  ;;  %v187_v33 = vld [vmem:[%s463_s20 + $0x68] sm:$0xff]  ;;  %v188_v37 = vld [vmem:[%s463_s20 + $0x70] sm:$0xff] }
  0x13   : > { %v278_v27 = vmax.f32 %v246_v16, 0.0  ;;  %v279_v28 = vmax.f32 %v247_v17, 0.0  ;;  %v280_v29 = vmax.f32 %v248_v18, 0.0  ;;  %v252_v30 = vadd.f32 %v468_v1, %v216_v19  ;;  %v189_v42 = vld [vmem:[%s463_s20 + $0x78] sm:$0xff]  ;;  %v190_v54 = vld [vmem:[%s463_s20 + $0x80] sm:$0xff]  ;;  %v191_v55 = vld [vmem:[%s463_s20 + $0x88] sm:$0xff] }
  0x14   : > { %v281_v34 = vmax.f32 %v249_v20, 0.0  ;;  %v282_v35 = vmax.f32 %v250_v21, 0.0  ;;  %v253_v36 = vadd.f32 %v468_v1, %v217_v23  ;;  %v283_v38 = vmax.f32 %v251_v22, 0.0  ;;  %v192_v56 = vld [vmem:[%s463_s20 + $0x90] sm:$0xff]  ;;  %v193_v59 = vld [vmem:[%s463_s20 + $0x98] sm:$0xff]  ;;  %v194_v63 = vld [vmem:[%s463_s20 + $0xa0] sm:$0xff] }
  0x15   : > { %310 = vst [vmem:[%s491_s25] sm:$0xff] %v278_v27  ;;  %v218_v39 = vmul.f32 %v458_v0, %v182_v24  ;;  %v219_v40 = vmul.f32 %v458_v0, %v183_v25  ;;  %v220_v41 = vmul.f32 %v458_v0, %v184_v26  ;;  %v284_v43 = vmax.f32 %v252_v30, 0.0  ;;  %v195_v6 = vld [vmem:[%s463_s20 + $0xa8] sm:$0xff]  ;;  %v196_v10 = vld [vmem:[%s463_s20 + $0xb0] sm:$0xff]  ;;  %v197_v14 = vld [vmem:[%s463_s20 + $0xb8] sm:$0xff] }
  0x16   : > { %311 = vst [vmem:[%s491_s25 + $0x8] sm:$0xff] %v279_v28  ;;  %v221_v44 = vmul.f32 %v458_v0, %v185_v31  ;;  %v222_v45 = vmul.f32 %v458_v0, %v186_v32  ;;  %v223_v46 = vmul.f32 %v458_v0, %v187_v33  ;;  %v224_v50 = vmul.f32 %v458_v0, %v188_v37  ;;  %v198_v18 = vld [vmem:[%s463_s20 + $0xc0] sm:$0xff]  ;;  %v199_v22 = vld [vmem:[%s463_s20 + $0xc8] sm:$0xff]  ;;  %v200_v26 = vld [vmem:[%s463_s20 + $0xd0] sm:$0xff] }
  0x17   : > { %312 = vst [vmem:[%s491_s25 + $0x10] sm:$0xff] %v280_v29  ;;  %v254_v47 = vadd.f32 %v468_v1, %v218_v39  ;;  %v255_v48 = vadd.f32 %v468_v1, %v219_v40  ;;  %v256_v49 = vadd.f32 %v468_v1, %v220_v41  ;;  %v285_v51 = vmax.f32 %v253_v36, 0.0  ;;  %v201_v30 = vld [vmem:[%s463_s20 + $0xd8] sm:$0xff] }
  0x18   : > { %313 = vst [vmem:[%s491_s25 + $0x18] sm:$0xff] %v281_v34  ;;  %v257_v52 = vadd.f32 %v468_v1, %v221_v44  ;;  %v225_v53 = vmul.f32 %v458_v0, %v189_v42  ;;  %v258_v58 = vadd.f32 %v468_v1, %v222_v45  ;;  %v259_v62 = vadd.f32 %v468_v1, %v223_v46  ;;  %v202_v34 = vld [vmem:[%s463_s20 + $0xe0] sm:$0xff]  ;;  %v204_v42 = vld [vmem:[%s463_s20 + $0xf0] sm:$0xff]  ;;  %v205_v46 = vld [vmem:[%s463_s20 + $0xf8] sm:$0xff] }
  0x19   : > { %314 = vst [vmem:[%s491_s25 + $0x20] sm:$0xff] %v282_v35  ;;  %v286_v57 = vmax.f32 %v254_v47, 0.0  ;;  %v287_v60 = vmax.f32 %v255_v48, 0.0  ;;  %v288_v61 = vmax.f32 %v256_v49, 0.0  ;;  %v260_v2 = vadd.f32 %v468_v1, %v224_v50 }
  0x1a   : > { %315 = vst [vmem:[%s491_s25 + $0x28] sm:$0xff] %v283_v38  ;;  %v226_v3 = vmul.f32 %v458_v0, %v190_v54  ;;  %v227_v4 = vmul.f32 %v458_v0, %v191_v55  ;;  %v228_v5 = vmul.f32 %v458_v0, %v192_v56  ;;  %v289_v7 = vmax.f32 %v257_v52, 0.0  ;;  %v203_v38 = vld [vmem:[%s463_s20 + $0xe8] sm:$0xff] }
  0x1b   : > { %316 = vst [vmem:[%s491_s25 + $0x30] sm:$0xff] %v284_v43  ;;  %v261_v8 = vadd.f32 %v468_v1, %v225_v53  ;;  %v229_v9 = vmul.f32 %v458_v0, %v193_v59  ;;  %v290_v11 = vmax.f32 %v258_v58, 0.0  ;;  %v230_v13 = vmul.f32 %v458_v0, %v194_v63 }
  0x1c   : > { %317 = vst [vmem:[%s491_s25 + $0x38] sm:$0xff] %v285_v51  ;;  %v262_v12 = vadd.f32 %v468_v1, %v226_v3  ;;  %v291_v15 = vmax.f32 %v259_v62, 0.0  ;;  %v263_v16 = vadd.f32 %v468_v1, %v227_v4  ;;  %v231_v17 = vmul.f32 %v458_v0, %v195_v6 }
  0x1d   : > { %318 = vst [vmem:[%s491_s25 + $0x40] sm:$0xff] %v286_v57  ;;  %v292_v19 = vmax.f32 %v260_v2, 0.0  ;;  %v264_v20 = vadd.f32 %v468_v1, %v228_v5  ;;  %v232_v21 = vmul.f32 %v458_v0, %v196_v10  ;;  %v293_v23 = vmax.f32 %v261_v8, 0.0 }
  0x1e   : > { %319 = vst [vmem:[%s491_s25 + $0x48] sm:$0xff] %v287_v60  ;;  %v265_v24 = vadd.f32 %v468_v1, %v229_v9  ;;  %v233_v25 = vmul.f32 %v458_v0, %v197_v14  ;;  %v294_v27 = vmax.f32 %v262_v12, 0.0  ;;  %v266_v28 = vadd.f32 %v468_v1, %v230_v13 }
  0x1f   : > { %320 = vst [vmem:[%s491_s25 + $0x50] sm:$0xff] %v288_v61  ;;  %v234_v29 = vmul.f32 %v458_v0, %v198_v18  ;;  %v295_v31 = vmax.f32 %v263_v16, 0.0  ;;  %v267_v32 = vadd.f32 %v468_v1, %v231_v17  ;;  %v235_v33 = vmul.f32 %v458_v0, %v199_v22 }
  0x20   : > { %321 = vst [vmem:[%s491_s25 + $0x58] sm:$0xff] %v289_v7  ;;  %v296_v35 = vmax.f32 %v264_v20, 0.0  ;;  %v268_v36 = vadd.f32 %v468_v1, %v232_v21  ;;  %v236_v37 = vmul.f32 %v458_v0, %v200_v26  ;;  %v297_v39 = vmax.f32 %v265_v24, 0.0 }
  0x21   : > { %322 = vst [vmem:[%s491_s25 + $0x60] sm:$0xff] %v290_v11  ;;  %v269_v40 = vadd.f32 %v468_v1, %v233_v25  ;;  %v237_v41 = vmul.f32 %v458_v0, %v201_v30  ;;  %v298_v43 = vmax.f32 %v266_v28, 0.0  ;;  %v270_v44 = vadd.f32 %v468_v1, %v234_v29 }
  0x22   : > { %323 = vst [vmem:[%s491_s25 + $0x68] sm:$0xff] %v291_v15  ;;  %v238_v45 = vmul.f32 %v458_v0, %v202_v34  ;;  %v299_v47 = vmax.f32 %v267_v32, 0.0  ;;  %v271_v48 = vadd.f32 %v468_v1, %v235_v33  ;;  %v239_v49 = vmul.f32 %v458_v0, %v203_v38 }
  0x23   : > { %324 = vst [vmem:[%s491_s25 + $0x70] sm:$0xff] %v292_v19  ;;  %v300_v50 = vmax.f32 %v268_v36, 0.0  ;;  %v272_v51 = vadd.f32 %v468_v1, %v236_v37  ;;  %v240_v52 = vmul.f32 %v458_v0, %v204_v42  ;;  %v301_v53 = vmax.f32 %v269_v40, 0.0 }
  0x24   : > { %325 = vst [vmem:[%s491_s25 + $0x78] sm:$0xff] %v293_v23  ;;  %v273_v54 = vadd.f32 %v468_v1, %v237_v41  ;;  %v241_v55 = vmul.f32 %v458_v0, %v205_v46  ;;  %v302_v56 = vmax.f32 %v270_v44, 0.0  ;;  %v274_v57 = vadd.f32 %v468_v1, %v238_v45 }
  0x25   : > { %326 = vst [vmem:[%s491_s25 + $0x80] sm:$0xff] %v294_v27  ;;  %v303_v58 = vmax.f32 %v271_v48, 0.0  ;;  %v275_v59 = vadd.f32 %v468_v1, %v239_v49  ;;  %v304_v60 = vmax.f32 %v272_v51, 0.0  ;;  %v276_v61 = vadd.f32 %v468_v1, %v240_v52 }
  0x26   : > { %327 = vst [vmem:[%s491_s25 + $0x88] sm:$0xff] %v295_v31  ;;  %v305_v0 = vmax.f32 %v273_v54, 0.0  ;;  %v277_v62 = vadd.f32 %v468_v1, %v241_v55  ;;  %v306_v63 = vmax.f32 %v274_v57, 0.0 }
  0x27   : > { %328 = vst [vmem:[%s491_s25 + $0x90] sm:$0xff] %v296_v35  ;;  %v307_v2 = vmax.f32 %v275_v59, 0.0  ;;  %v308_v3 = vmax.f32 %v276_v61, 0.0 }
  0x28   : > { %329 = vst [vmem:[%s491_s25 + $0x98] sm:$0xff] %v297_v39  ;;  %v309_v4 = vmax.f32 %v277_v62, 0.0 }
  0x29   : > { %330 = vst [vmem:[%s491_s25 + $0xa0] sm:$0xff] %v298_v43 }
  0x2a   : > { %331 = vst [vmem:[%s491_s25 + $0xa8] sm:$0xff] %v299_v47 }
  0x2b   : > { %332 = vst [vmem:[%s491_s25 + $0xb0] sm:$0xff] %v300_v50 }
  0x2c   : > { %333 = vst [vmem:[%s491_s25 + $0xb8] sm:$0xff] %v301_v53 }
  0x2d   : > { %334 = vst [vmem:[%s491_s25 + $0xc0] sm:$0xff] %v302_v56 }
  0x2e   : > { %335 = vst [vmem:[%s491_s25 + $0xc8] sm:$0xff] %v303_v58 }
  0x2f   : > { %336 = vst [vmem:[%s491_s25 + $0xd0] sm:$0xff] %v304_v60 }
  0x30   : > { %337 = vst [vmem:[%s491_s25 + $0xd8] sm:$0xff] %v305_v0 }
  0x31   : > { %338 = vst [vmem:[%s491_s25 + $0xe0] sm:$0xff] %v306_v63 }
  0x32   : > { %339 = vst [vmem:[%s491_s25 + $0xe8] sm:$0xff] %v307_v2 }
  0x33   : > { %340 = vst [vmem:[%s491_s25 + $0xf0] sm:$0xff] %v308_v3 }
  0x34   : > { %341 = vst [vmem:[%s491_s25 + $0xf8] sm:$0xff] %v309_v4 }
  0x35 PF: > { %s13_s12 = sadd.s32 1, %s425_s12  }
  0x36   : > { %p10_p4 = scmp.ge.s32.totalorder %s13_s12, 4  }
  0x38   :  { %12 = sbr.rel (!%p10_p4) target bundleno = 1 (0x1), region = 62 }

// kernel: conv2d_n_rel.2
= control target key start
LH: loop header
LB: loop body
LE: loop exit
PB: predicated region body
PF: predicated region fallthrough
CT: control target
= control target key end

     0   :  { %s888_s12 = smov 0   ;;  %s1107_s0 = inlined_call_operand.vmem [shape: bf16[512,128], index: 0, kind: input, shape index: {}]   ;;  %s1108_s1 = inlined_call_operand.vmem [shape: bf16[128,128], index: 1, kind: input, shape index: {}]   ;;  %s1109_s2 = inlined_call_operand.vmem [shape: f32[512,128], index: 2, kind: output, shape index: {0}]   ;;  %s1110_s3 = inlined_call_operand.vmem [shape: f32[2,8,128], index: 3, kind: output, shape index: {1}]  }
   0x1 LB: > { %s894_s13 = sadd.s32 4294967295, %s866_s12   ;;  %p700_p0 = scmp.ge.s32.totalorder %s866_s12, 1  ;;  %s866_s12 = sphi %s888_s12, %s14_s12  }
   0x2   : > { %p141_p1 = scmp.lt.s32.totalorder %s866_s12, 3 }
   0x4   : > { %p142_p2 = pnand %p700_p0, %p141_p1 }
   0x5   : > { %s701_s22 = sshll.u32 (!%p142_p2), %s894_s13, 5  ;;  %p181_p4 = scmp.lt.s32.totalorder (!%p142_p2), %s894_s13, 1 }
   0x6   : > { %145 = sbr.rel (%p142_p2) target bundleno = 292 (0x124), region = 28  ;;  %p170_p3 = scmp.lt.s32.totalorder (!%p142_p2), %s701_s22, 63 }
   0xb   : > { %v827_v0 = vld [vmem:[%s1108_s1 + $0x38] sm:$0xff]  ;;  %v826_v1 = vld [vmem:[%s1108_s1 + $0x30] sm:$0xff]  ;;  %v825_v2 = vld [vmem:[%s1108_s1 + $0x28] sm:$0xff]  ;;  %s1112_s22 = smov (!%p170_p3, %s701_s22), 63  ;;  %s1114_s13 = smov (!%p181_p4, %s894_s13), 1  ;;  %vm604_vm0 = vcmask 1040384  }
   0xc   : > { %377 = vmatpush.bf16.msra.mxu0 %v827_v0  ;;  %828 = vmatpush.bf16.msra.mxu1 %v827_v0  ;;  %v824_v3 = vld [vmem:[%s1108_s1 + $0x20] sm:$0xff]  ;;  %v823_v4 = vld [vmem:[%s1108_s1 + $0x18] sm:$0xff]  ;;  %v822_v5 = vld [vmem:[%s1108_s1 + $0x10] sm:$0xff]  ;;  %s702_s29 = sshll.u32 %s1112_s22, 2  ;;  %s704_s8 = sshll.u32 %s1112_s22, 3  ;;  %vm606_vm1 = vcmask 1041408  }
   0xd   : > { %829 = vmatpush.bf16.msra.mxu2 %v827_v0  ;;  %830 = vmatpush.bf16.msra.mxu3 %v827_v0  ;;  %v821_v6 = vld [vmem:[%s1108_s1 + $0x8] sm:$0xff]  ;;  %v820_v7 = vld [vmem:[%s1108_s1] sm:$0xff]  ;;  %s929_s7 = scalar_lea.vmem %s1107_s0, %s702_s29  ;;  %s951_s11 = scalar_lea.vmem %s1109_s2, %s704_s8 }
   0xe   : > { %v804_v8 = vld [vmem:[%s929_s7] sm:$0xff]  ;;  %v805_v12 = vld [vmem:[%s929_s7 + $0x8] sm:$0xff]  ;;  %v806_v16 = vld [vmem:[%s929_s7 + $0x10] sm:$0xff]  ;;  %s705_s14 = sshll.u32 %s1114_s13, 3 }
   0xf   : > { %v808_v9 = vld [vmem:[%s929_s7 + $0x20] sm:$0xff]  ;;  %v809_v13 = vld [vmem:[%s929_s7 + $0x28] sm:$0xff]  ;;  %v810_v17 = vld [vmem:[%s929_s7 + $0x30] sm:$0xff]  ;;  %s184_s17 = scalar_lea.vmem %s1110_s3, %s705_s14 }
  0x10   : > { %378 = vmatpush.bf16.msra.mxu0 %v826_v1  ;;  %831 = vmatpush.bf16.msra.mxu1 %v826_v1  ;;  %v812_v10 = vld [vmem:[%s929_s7 + $0x40] sm:$0xff]  ;;  %v813_v14 = vld [vmem:[%s929_s7 + $0x48] sm:$0xff]  ;;  %v814_v18 = vld [vmem:[%s929_s7 + $0x50] sm:$0xff] }
  0x11   : > { %832 = vmatpush.bf16.msra.mxu2 %v826_v1  ;;  %833 = vmatpush.bf16.msra.mxu3 %v826_v1  ;;  %v816_v11 = vld [vmem:[%s929_s7 + $0x60] sm:$0xff]  ;;  %v817_v15 = vld [vmem:[%s929_s7 + $0x68] sm:$0xff]  ;;  %v818_v19 = vld [vmem:[%s929_s7 + $0x70] sm:$0xff] }
  0x12   : > { %v807_v20 = vld [vmem:[%s929_s7 + $0x18] sm:$0xff] }
  0x13   : > { %v811_v21 = vld [vmem:[%s929_s7 + $0x38] sm:$0xff] }
  0x14   : > { %379 = vmatpush.bf16.msra.mxu0 %v825_v2  ;;  %834 = vmatpush.bf16.msra.mxu1 %v825_v2  ;;  %v815_v22 = vld [vmem:[%s929_s7 + $0x58] sm:$0xff] }
  0x15   : > { %835 = vmatpush.bf16.msra.mxu2 %v825_v2  ;;  %836 = vmatpush.bf16.msra.mxu3 %v825_v2  ;;  %v819_v23 = vld [vmem:[%s929_s7 + $0x78] sm:$0xff] }
  0x18   : > { %380 = vmatpush.bf16.msra.mxu0 %v824_v3  ;;  %837 = vmatpush.bf16.msra.mxu1 %v824_v3 }
  0x19   : > { %838 = vmatpush.bf16.msra.mxu2 %v824_v3  ;;  %839 = vmatpush.bf16.msra.mxu3 %v824_v3 }
  0x1c   : > { %381 = vmatpush.bf16.msra.mxu0 %v823_v4  ;;  %840 = vmatpush.bf16.msra.mxu1 %v823_v4 }
  0x1d   : > { %841 = vmatpush.bf16.msra.mxu2 %v823_v4  ;;  %842 = vmatpush.bf16.msra.mxu3 %v823_v4 }
  0x20   : > { %382 = vmatpush.bf16.msra.mxu0 %v822_v5  ;;  %843 = vmatpush.bf16.msra.mxu1 %v822_v5 }
  0x21   : > { %844 = vmatpush.bf16.msra.mxu2 %v822_v5  ;;  %845 = vmatpush.bf16.msra.mxu3 %v822_v5 }
  0x24   : > { %383 = vmatpush.bf16.msra.mxu0 %v821_v6  ;;  %846 = vmatpush.bf16.msra.mxu1 %v821_v6 }
  0x25   : > { %847 = vmatpush.bf16.msra.mxu2 %v821_v6  ;;  %848 = vmatpush.bf16.msra.mxu3 %v821_v6 }
  0x28   : > { %384 = vmatpush.bf16.msra.mxu0 %v820_v7  ;;  %849 = vmatpush.bf16.msra.mxu1 %v820_v7 }
  0x29   : > { %850 = vmatpush.bf16.msra.mxu2 %v820_v7  ;;  %851 = vmatpush.bf16.msra.mxu3 %v820_v7 }
  0x2b   : > { %385 = vmatmul.bf16.vlgmr.msra.gmra.mxu0 %v804_v8  ;;  %405 = vmatmul.bf16.vlgmr.msra.gmra.mxu1 %v808_v9 }
  0x2c   : > { %425 = vmatmul.bf16.vlgmr.msra.gmra.mxu2 %v812_v10  ;;  %445 = vmatmul.bf16.vlgmr.msra.gmra.mxu3 %v816_v11 }
  0x3b   : > { %390 = vmatmul.bf16.gmra.mxu0 %v805_v12  ;;  %410 = vmatmul.bf16.gmra.mxu1 %v809_v13 }
  0x3c   : > { %430 = vmatmul.bf16.gmra.mxu2 %v813_v14  ;;  %450 = vmatmul.bf16.gmra.mxu3 %v817_v15 }
  0x4b   : > { %395 = vmatmul.bf16.gmra.mxu0 %v806_v16  ;;  %415 = vmatmul.bf16.gmra.mxu1 %v810_v17 }
  0x4c   : > { %435 = vmatmul.bf16.gmra.mxu2 %v814_v18  ;;  %455 = vmatmul.bf16.gmra.mxu3 %v818_v19 }
  0x5b   : > { %400 = vmatmul.bf16.gmra.mxu0 %v807_v20  ;;  %420 = vmatmul.bf16.gmra.mxu1 %v811_v21 }
  0x5c   : > { %440 = vmatmul.bf16.gmra.mxu2 %v815_v22  ;;  %460 = vmatmul.bf16.gmra.mxu3 %v819_v23 }
  0xa8   : > { %v386_v24 = vpop.f32.mrf.mxu0  ;;  %v953_v25 = vpop.f32.mrf.mxu1 }
  0xa9   : > { %466 = vst [vmem:[%s951_s11] sm:$0xff] %v386_v24  ;;  %v535_v47 = vmul.f32 %v386_v24, %v386_v24  ;;  %v543_v11 = vmul.f32 %v953_v25, %v953_v25 }
  0xaa   : > { %474 = vst [vmem:[%s951_s11 + $0x40] sm:$0xff] %v953_v25 }
  0xaf   : > { %v958_v26 = vpop.f32.mrf.mxu2  ;;  %v965_v29 = vpop.f32.mrf.mxu3 }
  0xb0   : > { %v388_v27 = vpop.f32.mrf.mxu0  ;;  %v960_v28 = vpop.f32.mrf.mxu1  ;;  %482 = vst [vmem:[%s951_s11 + $0x80] sm:$0xff] %v958_v26 }
  0xb1   : > { %467 = vst [vmem:[%s951_s11 + $0x8] sm:$0xff] %v388_v27  ;;  %v536_v46 = vmul.f32 %v388_v27, %v388_v27  ;;  %v498_v48 = vadd.f32 %v388_v27, %v386_v24  ;;  %v544_v14 = vmul.f32 %v960_v28, %v960_v28 }
  0xb2   : > { %475 = vst [vmem:[%s951_s11 + $0x48] sm:$0xff] %v960_v28 }
  0xb3   : > { %490 = vst [vmem:[%s951_s11 + $0xc0] sm:$0xff] %v965_v29  ;;  %v567_v50 = vadd.f32 %v536_v46, %v535_v47 }
  0xb7   : > { %v971_v30 = vpop.f32.mrf.mxu2  ;;  %v978_v33 = vpop.f32.mrf.mxu3 }
  0xb8   : > { %v391_v31 = vpop.f32.mrf.mxu0  ;;  %v973_v32 = vpop.f32.mrf.mxu1  ;;  %483 = vst [vmem:[%s951_s11 + $0x88] sm:$0xff] %v971_v30 }
  0xb9   : > { %468 = vst [vmem:[%s951_s11 + $0x10] sm:$0xff] %v391_v31  ;;  %v537_v49 = vmul.f32 %v391_v31, %v391_v31  ;;  %v499_v51 = vadd.f32 %v498_v48, %v391_v31  ;;  %v545_v17 = vmul.f32 %v973_v32, %v973_v32 }
  0xba   : > { %476 = vst [vmem:[%s951_s11 + $0x50] sm:$0xff] %v973_v32 }
  0xbb   : > { %491 = vst [vmem:[%s951_s11 + $0xc8] sm:$0xff] %v978_v33  ;;  %v568_v56 = vadd.f32 %v567_v50, %v537_v49  ;;  %v551_v49 = vmul.f32 %v958_v26, %v958_v26 }
  0xbf   : > { %v984_v34 = vpop.f32.mrf.mxu2  ;;  %v991_v37 = vpop.f32.mrf.mxu3 }
  0xc0   : > { %v393_v35 = vpop.f32.mrf.mxu0  ;;  %v986_v36 = vpop.f32.mrf.mxu1  ;;  %484 = vst [vmem:[%s951_s11 + $0x90] sm:$0xff] %v984_v34 }
  0xc1   : > { %469 = vst [vmem:[%s951_s11 + $0x18] sm:$0xff] %v393_v35  ;;  %v538_v52 = vmul.f32 %v393_v35, %v393_v35  ;;  %v500_v57 = vadd.f32 %v499_v51, %v393_v35  ;;  %v546_v21 = vmul.f32 %v986_v36, %v986_v36 }
  0xc2   : > { %477 = vst [vmem:[%s951_s11 + $0x58] sm:$0xff] %v986_v36 }
  0xc3   : > { %492 = vst [vmem:[%s951_s11 + $0xd0] sm:$0xff] %v991_v37  ;;  %v569_v60 = vadd.f32 %v568_v56, %v538_v52 }
  0xc7   : > { %v997_v38 = vpop.f32.mrf.mxu2  ;;  %v1004_v41 = vpop.f32.mrf.mxu3 }
  0xc8   : > { %v396_v39 = vpop.f32.mrf.mxu0  ;;  %v999_v40 = vpop.f32.mrf.mxu1  ;;  %485 = vst [vmem:[%s951_s11 + $0x98] sm:$0xff] %v997_v38 }
  0xc9   : > { %470 = vst [vmem:[%s951_s11 + $0x20] sm:$0xff] %v396_v39  ;;  %v539_v58 = vmul.f32 %v396_v39, %v396_v39  ;;  %v501_v61 = vadd.f32 %v500_v57, %v396_v39  ;;  %v554_v57 = vmul.f32 %v997_v38, %v997_v38 }
  0xca   : > { %478 = vst [vmem:[%s951_s11 + $0x60] sm:$0xff] %v999_v40 }
  0xcb   : > { %493 = vst [vmem:[%s951_s11 + $0xd8] sm:$0xff] %v1004_v41  ;;  %v570_v63 = vadd.f32 %v569_v60, %v539_v58 }
  0xcf   : > { %v1010_v42 = vpop.f32.mrf.mxu2  ;;  %v1017_v45 = vpop.f32.mrf.mxu3 }
  0xd0   : > { %v398_v43 = vpop.f32.mrf.mxu0  ;;  %v1012_v44 = vpop.f32.mrf.mxu1  ;;  %486 = vst [vmem:[%s951_s11 + $0xa0] sm:$0xff] %v1010_v42 }
  0xd1   : > { %471 = vst [vmem:[%s951_s11 + $0x28] sm:$0xff] %v398_v43  ;;  %v540_v62 = vmul.f32 %v398_v43, %v398_v43  ;;  %v502_v0 = vadd.f32 %v501_v61, %v398_v43  ;;  %v548_v31 = vmul.f32 %v1012_v44, %v1012_v44 }
  0xd2   : > { %479 = vst [vmem:[%s951_s11 + $0x68] sm:$0xff] %v1012_v44 }
  0xd3   : > { %494 = vst [vmem:[%s951_s11 + $0xe0] sm:$0xff] %v1017_v45  ;;  %v571_v2 = vadd.f32 %v570_v63, %v540_v62 }
  0xd7   : > { %v1023_v53 = vpop.f32.mrf.mxu2  ;;  %v1028_v59 = vpop.f32.mrf.mxu3 }
  0xd8   : > { %v401_v54 = vpop.f32.mrf.mxu0  ;;  %v421_v55 = vpop.f32.mrf.mxu1  ;;  %487 = vst [vmem:[%s951_s11 + $0xa8] sm:$0xff] %v1023_v53  ;;  %v556_v63 = vmul.f32 %v1023_v53, %v1023_v53 }
  0xd9   : > { %472 = vst [vmem:[%s951_s11 + $0x30] sm:$0xff] %v401_v54  ;;  %v541_v1 = vmul.f32 %v401_v54, %v401_v54  ;;  %v503_v3 = vadd.f32 %v502_v0, %v401_v54  ;;  %v549_v43 = vmul.f32 %v421_v55, %v421_v55 }
  0xda   : > { %480 = vst [vmem:[%s951_s11 + $0x70] sm:$0xff] %v421_v55 }
  0xdb   : > { %495 = vst [vmem:[%s951_s11 + $0xe8] sm:$0xff] %v1028_v59  ;;  %v572_v7 = vadd.f32 %v571_v2, %v541_v1 }
  0xdf   : > { %v441_v4 = vpop.f32.mrf.mxu2  ;;  %v1035_v10 = vpop.f32.mrf.mxu3 }
  0xe0   : > { %v403_v5 = vpop.f32.mrf.mxu0  ;;  %v423_v6 = vpop.f32.mrf.mxu1  ;;  %488 = vst [vmem:[%s951_s11 + $0xb0] sm:$0xff] %v441_v4  ;;  %v557_v2 = vmul.f32 %v441_v4, %v441_v4 }
  0xe1   : > { %473 = vst [vmem:[%s951_s11 + $0x38] sm:$0xff] %v403_v5  ;;  %v504_v8 = vadd.f32 %v503_v3, %v403_v5  ;;  %v542_v9 = vmul.f32 %v403_v5, %v403_v5 }
  0xe2   : > { %481 = vst [vmem:[%s951_s11 + $0x78] sm:$0xff] %v423_v6 }
  0xe3   : > { %v505_v12 = vadd.f32 %v504_v8, %v953_v25  ;;  %v573_v13 = vadd.f32 %v572_v7, %v542_v9  ;;  %496 = vst [vmem:[%s951_s11 + $0xf0] sm:$0xff] %v1035_v10  ;;  %v547_v25 = vmul.f32 %v999_v40, %v999_v40 }
  0xe5   : > { %v506_v15 = vadd.f32 %v505_v12, %v960_v28  ;;  %v574_v16 = vadd.f32 %v573_v13, %v543_v11  ;;  %v562_v13 = vmul.f32 %v1004_v41, %v1004_v41 }
  0xe7   : > { %v507_v18 = vadd.f32 %v506_v15, %v973_v32  ;;  %v575_v19 = vadd.f32 %v574_v16, %v544_v14  ;;  %v443_v20 = vpop.f32.mrf.mxu2  ;;  %v463_v24 = vpop.f32.mrf.mxu3  ;;  %v563_v15 = vmul.f32 %v1017_v45, %v1017_v45 }
  0xe8   : > { %489 = vst [vmem:[%s951_s11 + $0xb8] sm:$0xff] %v443_v20 }
  0xe9   : > { %v576_v22 = vadd.f32 %v575_v19, %v545_v17  ;;  %v508_v23 = vadd.f32 %v507_v18, %v986_v36  ;;  %497 = vst [vmem:[%s951_s11 + $0xf8] sm:$0xff] %v463_v24  ;;  %v550_v36 = vmul.f32 %v423_v6, %v423_v6 }
  0xeb   : > { %v509_v27 = vadd.f32 %v508_v23, %v999_v40  ;;  %v577_v28 = vadd.f32 %v576_v22, %v546_v21  ;;  %v552_v40 = vmul.f32 %v971_v30, %v971_v30  ;;  %v565_v21 = vmul.f32 %v1035_v10, %v1035_v10 }
  0xec   : > { %v566_v23 = vmul.f32 %v463_v24, %v463_v24 }
  0xed   : > { %v510_v32 = vadd.f32 %v509_v27, %v1012_v44  ;;  %v578_v35 = vadd.f32 %v577_v28, %v547_v25  ;;  %v553_v44 = vmul.f32 %v984_v34, %v984_v34 }
  0xef   : > { %v511_v39 = vadd.f32 %v510_v32, %v421_v55  ;;  %v579_v46 = vadd.f32 %v578_v35, %v548_v31 }
  0xf1   : > { %v580_v47 = vadd.f32 %v579_v46, %v549_v43  ;;  %v512_v48 = vadd.f32 %v511_v39, %v423_v6  ;;  %v558_v6 = vmul.f32 %v443_v20, %v443_v20 }
  0xf3   : > { %v513_v50 = vadd.f32 %v512_v48, %v958_v26  ;;  %v581_v51 = vadd.f32 %v580_v47, %v550_v36  ;;  %v555_v26 = vmul.f32 %v1010_v42, %v1010_v42 }
  0xf5   : > { %v514_v52 = vadd.f32 %v513_v50, %v971_v30  ;;  %v582_v54 = vadd.f32 %v581_v51, %v551_v49 }
  0xf7   : > { %v515_v55 = vadd.f32 %v514_v52, %v984_v34  ;;  %v583_v56 = vadd.f32 %v582_v54, %v552_v40 }
  0xf9   : > { %v584_v58 = vadd.f32 %v583_v56, %v553_v44  ;;  %v516_v60 = vadd.f32 %v515_v55, %v997_v38  ;;  %v559_v38 = vmul.f32 %v965_v29, %v965_v29 }
  0xfb   : > { %v517_v61 = vadd.f32 %v516_v60, %v1010_v42  ;;  %v585_v62 = vadd.f32 %v584_v58, %v554_v57  ;;  %v560_v42 = vmul.f32 %v978_v33, %v978_v33 }
  0xfd   : > { %v518_v30 = vadd.f32 %v517_v61, %v1023_v53  ;;  %v586_v0 = vadd.f32 %v585_v62, %v555_v26  ;;  %v561_v53 = vmul.f32 %v991_v37, %v991_v37 }
  0xff   : > { %v587_v34 = vadd.f32 %v586_v0, %v556_v63  ;;  %v519_v1 = vadd.f32 %v518_v30, %v441_v4 }
 0x101   : > { %v588_v3 = vadd.f32 %v587_v34, %v557_v2  ;;  %v520_v5 = vadd.f32 %v519_v1, %v443_v20 }
 0x103   : > { %v521_v7 = vadd.f32 %v520_v5, %v965_v29  ;;  %v589_v8 = vadd.f32 %v588_v3, %v558_v6 }
 0x105   : > { %v522_v9 = vadd.f32 %v521_v7, %v978_v33  ;;  %v590_v11 = vadd.f32 %v589_v8, %v559_v38 }
 0x107   : > { %v523_v4 = vadd.f32 %v522_v9, %v991_v37  ;;  %v591_v12 = vadd.f32 %v590_v11, %v560_v42  ;;  %v564_v37 = vmul.f32 %v1028_v59, %v1028_v59 }
 0x109   : > { %v592_v14 = vadd.f32 %v591_v12, %v561_v53  ;;  %v524_v29 = vadd.f32 %v523_v4, %v1004_v41 }
 0x10b   : > { %v525_v16 = vadd.f32 %v524_v29, %v1017_v45  ;;  %v593_v33 = vadd.f32 %v592_v14, %v562_v13 }
 0x10d   : > { %v526_v17 = vadd.f32 %v525_v16, %v1028_v59  ;;  %v594_v18 = vadd.f32 %v593_v33, %v563_v15 }
 0x10f   : > { %v595_v19 = vadd.f32 %v594_v18, %v564_v37  ;;  %v527_v20 = vadd.f32 %v526_v17, %v1035_v10 }
 0x111   : > { %v596_v41 = vadd.f32 %v595_v19, %v565_v21  ;;  %v528_v22 = vadd.f32 %v527_v20, %v463_v24 }
 0x113   : > { %v529_v25 = vrot.slane %v528_v22, 4  ;;  %v597_v27 = vadd.f32 %v596_v41, %v566_v23 }
 0x115   : > { %v530_v45 = vadd.f32 %v529_v25, %v528_v22  ;;  %v598_v28 = vrot.slane %v597_v27, 4 }
 0x117   : > { %v531_v31 = vrot.slane %v530_v45, 2  ;;  %v599_v32 = vadd.f32 %v598_v28, %v597_v27 }
 0x119   : > { %v532_v35 = vadd.f32 %v531_v31, %v530_v45  ;;  %v600_v59 = vrot.slane %v599_v32, 2 }
 0x11b   : > { %v533_v39 = vrot.slane %v532_v35, 1  ;;  %v601_v43 = vadd.f32 %v600_v59, %v599_v32 }
 0x11d   : > { %v602_v46 = vrot.slane %v601_v43, 1  ;;  %v534_v47 = vadd.f32 %v533_v39, %v532_v35 }
 0x11f   : > { %v603_v10 = vadd.f32 %v602_v46, %v601_v43 }
 0x121   : > { %v605_v24 = vsel %vm604_vm0, %v534_v47, %v603_v10 }
 0x122   : > { %v607_v48 = vsel %vm606_vm1, %v605_v24, 0.0 }
 0x123   : > { %608 = vst [vmem:[%s184_s17] sm:$0xff] %v607_v48 }
 0x124 PF: > { %s14_s12 = sadd.s32 1, %s866_s12  }
 0x125   : > { %p11_p5 = scmp.ge.s32.totalorder %s14_s12, 4  }
 0x127   :  { %13 = sbr.rel (!%p11_p5) target bundleno = 1 (0x1), region = 70 }

</bundles_post_ra>
